<compile_context>
chip_gen: v6e
topology: v6e:2x2x1
jax: 0.10.0
libtpu: 0.0.40
codegen_flags: <defaults>
</compile_context>

<pallas_src>
import functools

import jax
import jax.numpy as jnp
from jax.experimental import pallas as pl
from jax.experimental.pallas import tpu as pltpu


def _ts_return_kernel(xT_ref, o_ref, *, d, stride, w):
    # xT_ref block: (T, Rb) with rows on lanes; o_ref block: (w, Rb).
    # Two sublane-strided loads fetch all w window-starts / window-ends at once.
    # Cast AFTER slicing so only 2*w rows (not all T) get up-converted.
    firsts = xT_ref[pl.ds(0, w, stride=stride), :].astype(jnp.float32)
    lasts = xT_ref[pl.ds(d - 1, w, stride=stride), :].astype(jnp.float32)
    # Exact division to stay bit-close to the PyTorch reference.
    # (Division by X[..., start] is unguarded, matching PyTorch semantics.)
    o_ref[...] = ((lasts - firsts) / firsts).astype(o_ref.dtype)


def ts_return(x, d=10, stride=10):
    """x: (batch, n, T) float array -> (batch, n, w) float32."""
    batch, n, T = x.shape
    w = (T - d) // stride + 1          # integer arithmetic: no FP off-by-one
    assert w >= 1, "T too small for given d/stride"
    rows = batch * n

    # Rows onto the lane axis (layout plumbing handled by XLA in the wrapper).
    xT = x.reshape(rows, T).T          # (T, rows)

    # Lane tile: multiple of 128, sized so double-buffered in+out blocks stay
    # well under the scoped-VMEM limit on all generations (v5e/v6e/v7x).
    in_itemsize = jnp.dtype(x.dtype).itemsize
    lane_block = min(512, ((rows + 127) // 128) * 128)
    while lane_block > 128 and 2 * lane_block * (T * in_itemsize + w * 4) > (24 << 20):
        lane_block //= 2

    num_tiles = -(-rows // lane_block)
    if num_tiles > 1 and num_tiles % 2 == 1:
        num_tiles += 1                 # even grid -> keeps both v7x TCs busy
    rows_p = num_tiles * lane_block
    if rows_p != rows:
        # Pad with 1.0 so dead lanes compute a harmless 0/1 (sliced off below).
        xT = jnp.pad(xT, ((0, 0), (0, rows_p - rows)), constant_values=1.0)

    kernel = functools.partial(_ts_return_kernel, d=d, stride=stride, w=w)

    outT = pl.pallas_call(
        kernel,
        out_shape=jax.ShapeDtypeStruct((w, rows_p), jnp.float32),
        grid_spec=pltpu.PrefetchScalarGridSpec(
            num_scalar_prefetch=0,
            grid=(num_tiles,),
            in_specs=[pl.BlockSpec((T, lane_block), lambda r: (0, r))],
            out_specs=pl.BlockSpec((w, lane_block), lambda r: (0, r)),
        ),
        compiler_params=pltpu.CompilerParams(
            dimension_semantics=("parallel",),
            vmem_limit_bytes=32 << 20,
        ),
        cost_estimate=pl.CostEstimate(
            flops=3 * rows_p * w,
            transcendentals=0,
            bytes_accessed=rows_p * (T * in_itemsize + w * 4),
        ),
    )(xT)

    # Back to (batch, n, w).
    return outT[:, :rows].T.reshape(batch, n, w)


def ts_return_ref(x, d=10, stride=10):
    """Pure-JAX reference mirroring the PyTorch loop."""
    batch, n, T = x.shape
    w = (T - d) // stride + 1
    cols = []
    for i in range(w):
        s = i * stride
        window = x[:, :, s:s + d]
        cols.append((window[:, :, -1] - window[:, :, 0]) / window[:, :, 0])
    return jnp.stack(cols, axis=-1).astype(jnp.float32)


if __name__ == "__main__":
    key = jax.random.PRNGKey(0)
    batch, n, T = 2, 4, 32
    d, stride = 10, 10
    # Keep values away from zero so the division is well-conditioned.
    x = jax.random.uniform(key, (batch, n, T), dtype=jnp.float32,
                           minval=1.0, maxval=2.0)

    out = ts_return(x, d=d, stride=stride)
    out = jax.block_until_ready(out)

    ref = ts_return_ref(x, d=d, stride=stride)
    assert out.shape == ref.shape, (out.shape, ref.shape)
    assert jnp.allclose(out, ref, atol=1e-5, rtol=1e-5), "mismatch vs reference"

    print("KERNEL_OK")
</pallas_src>

<mosaic_0001>
module attributes {stable_mosaic.version = 11 : i64} {
  func.func @_ts_return_kernel(%arg0: i32, %arg1: memref<32x128xf32, #tpu.memory_space<vmem>>, %arg2: memref<3x128xf32, #tpu.memory_space<vmem>>) attributes {dimension_semantics = [#tpu.dimension_semantics<parallel>], iteration_bounds = array<i64: 1>, scalar_prefetch = 0 : i64, scratch_operands = 0 : i64, tpu.core_type = #tpu.core_type<tc>, window_params = [{transform_indices = @transform_0, window_bounds = array<i64: 32, 128>}, {transform_indices = @transform_1, window_bounds = array<i64: 3, 128>}]} {
    %c0 = arith.constant 0 : index
    %c0_0 = arith.constant 0 : index
    %0 = tpu.strided_load %arg1[%c0, %c0_0] {strides = array<i32: 10, 1>} : memref<32x128xf32, #tpu.memory_space<vmem>>, vector<3x128xf32>
    %c9 = arith.constant 9 : index
    %c0_1 = arith.constant 0 : index
    %1 = tpu.strided_load %arg1[%c9, %c0_1] {strides = array<i32: 10, 1>} : memref<32x128xf32, #tpu.memory_space<vmem>>, vector<3x128xf32>
    %2 = arith.subf %1, %0 : vector<3x128xf32>
    %3 = arith.divf %2, %0 : vector<3x128xf32>
    %c0_2 = arith.constant 0 : index
    %c0_3 = arith.constant 0 : index
    %4 = vector.load %arg2[%c0_2, %c0_3] : memref<3x128xf32, #tpu.memory_space<vmem>>, vector<3x128xf32>
    tpu.vector_store %arg2[%c0_2, %c0_3], %3 {strides = array<i32>} : memref<3x128xf32, #tpu.memory_space<vmem>>, vector<3x128xf32>,
    return
  }
  func.func @transform_0(%arg0: i32) -> (i32, i32) {
    %c0_i32 = arith.constant 0 : i32
    %c0_i32_0 = arith.constant 0 : i32
    return %c0_i32, %arg0 : i32, i32
  }
  func.func @transform_1(%arg0: i32) -> (i32, i32) {
    %c0_i32 = arith.constant 0 : i32
    %c0_i32_0 = arith.constant 0 : i32
    return %c0_i32, %arg0 : i32, i32
  }
}

</mosaic_0001>

<bundles_post_ra>
// kernel: tpu_custom_call.1
= control target key start
LH: loop header
LB: loop body
LE: loop exit
PB: predicated region body
PF: predicated region fallthrough
CT: control target
= control target key end

     0   :  { %6 = vsyncpa [#allocation3], 0  ;;  %s115_s0 = inlined_call_operand.hbm [shape: f32[32,128], index: 0, kind: input, shape index: {}]   ;;  %s116_s1 = inlined_call_operand.hbm [shape: f32[3,128], index: 1, kind: output, shape index: {}]  }
   0x1   :  { %7 = vsyncpa [#allocation4], 0  ;;  %s95_s6 = smov [#allocation2]  }
   0x2   :  { %s13_s7 = sshll.u32 %s95_s6, 4  ;;  %s14_s7 = int_to_ptr.vmem [resolvable:$true] %s13_s7 }
   0x3   :  { %s59_s8 = scalar_lea.vmem %s14_s7, 512  ;;  %p64_p1 = scmp.lt.s32.totalorder %s14_s7, %s14_s7 }
   0x4   :  { %p60_p0 = scmp.ne.s32.totalorder %s14_s7, %s59_s8  ;;  %p65_p2 = scmp.lt.s32.totalorder %s59_s8, %s59_s8 }
   0x6   :  { %p66_p3 = por %p65_p2, %p64_p1 }
   0x8   :  { %p67_p4 = pnand %p66_p3, %p60_p0 }
   0xa   :  { %70 = shalt.err (!%p67_p4)
}
   0xb   :  { %s96_s9 = smov 128   ;;  %s97_s10 = smov 8  }
   0xc   :  { %19 = dma.hbm_to_vmem [thread:$0]  %s115_s0, 512, %s14_s7, [#allocation3], %s96_s9, %s96_s9, %s97_s10  }
   0xd   :  { %91 = dma.done.wait [#allocation3], 512  }
   0xe   :  { %92 = vsyncadd [#allocation3], 4294966784  ;;  %v23_v0 = vld [vmem:[#allocation2] ss:$10 sm:$0x7]  ;;  %s98_s13 = smov [#allocation5]  }
   0xf   :  { %49 = vrcp.f32 %v23_v0  ;;  %v25_v1 = vld [vmem:[#allocation2 + $0x9] ss:$10 sm:$0x7]  ;;  %s36_s14 = sshll.u32 %s98_s13, 4  ;;  %s37_s14 = int_to_ptr.vmem [resolvable:$true] %s36_s14 }
  0x10   :  { %v26_v2 = vsub.f32 %v25_v1, %v23_v0  ;;  %s71_s15 = scalar_lea.vmem %s37_s14, 64  ;;  %p76_p6 = scmp.lt.s32.totalorder %s37_s14, %s37_s14 }
  0x11   :  { %p72_p5 = scmp.ne.s32.totalorder %s37_s14, %s71_s15  ;;  %p77_p7 = scmp.lt.s32.totalorder %s71_s15, %s71_s15 }
  0x13   :  { %p78_p8 = por %p77_p7, %p76_p6 }
  0x15   :  { %p79_p9 = pnand %p78_p8, %p72_p5 }
  0x1c   :  { %v50_v3 = vpop.eup %49 }
  0x1d   :  { %v28_v4 = vmul.f32 %v50_v3, %v26_v2 }
  0x1f   :  { %29 = vst [vmem:[#allocation5] sm:$0x7] %v28_v4 }
  0x20   :  { %82 = shalt.err (!%p79_p9)
}
  0x21   :  { %39 = dma.vmem_to_hbm [thread:$0]  %s37_s14, 64, %s116_s1, [#allocation4]  }
  0x22   :  { %93 = dma.done.wait [#allocation4], 64  }
  0x23   :  { %94 = vsyncadd [#allocation4], 4294967232 }
  0x24   :  { %43 = vsyncpa [#allocation3], 1 }
  0x25   :  { %44 = vsyncpa [#allocation4], 1 }

</bundles_post_ra>
